<compile_context>
chip_gen: v7x
topology: tpu7x:2x2x1
jax: 0.10.0
libtpu: 0.0.40
codegen_flags: <defaults>
</compile_context>

<pallas_src>
import functools

import jax
import jax.numpy as jnp
from jax.experimental import pallas as pl
from jax.experimental.pallas import tpu as pltpu


_SMALL_N = 2048          # below this, plain JAX beats kernel launch overhead
_MAX_TILE_N = 64 * 1024  # cap on the lane (example) tile
_NUM_CORE_BLOCKS = 2     # leading "parallel" grid axis (v7x has 2 TensorCores)


def _round_up(x, m):
    return ((x + m - 1) // m) * m


def _vmem_capacity_bytes():
    try:
        cap = getattr(pltpu.get_tpu_info(), "vmem_capacity_bytes", None)
        if cap:
            return int(cap)
    except Exception:
        pass
    return 64 * 1024 * 1024  # conservative default (v7x per-core VMEM)


def _pick_tile_n(n, c, itemsize, max_tile_n):
    """Example-axis tile: as large as a per-generation VMEM budget allows."""
    max_tile_n = max(1024, (int(max_tile_n) // 1024) * 1024)
    vmem_cap = _vmem_capacity_bytes()
    budget = min(vmem_cap // 2, 64 * 1024 * 1024)  # 32 MB on v7x, 64 MB on v5e/v6e
    # Rough per-column VMEM bill (bytes):
    #   2x double-buffered logits + targets input blocks,
    #   ~7 live [C, T] f32/i32 intermediates,
    #   ~8 live [1, T] f32 intermediates (sublane-padded to 8),
    #   the resident (1, 2, T) f32 output block (sublane-padded, 2 buffers).
    per_col = 2 * (c * itemsize + 4) + 7 * c * 4 + 8 * 8 * 4 + 2 * 8 * 4
    tile = budget // per_col
    tile = min(tile, max_tile_n, _round_up(max(n, 1), 1024))
    tile = max(tile, 1024)
    tile -= tile % 1024
    return max(tile, 1024)


def _focal_partials_kernel(logits_ref, targets_ref, alpha_ref, out_ref, *,
                           n_total, tile_n, tiles_per_core):
    core = pl.program_id(0)   # "parallel" core-split axis
    tile = pl.program_id(1)   # "arbitrary" reduction axis over example tiles

    @pl.when(tile == 0)
    def _init():
        out_ref[...] = jnp.zeros(out_ref.shape, out_ref.dtype)

    x = logits_ref[...].astype(jnp.float32)       # [C, T]  classes x examples
    tgt = targets_ref[...]                        # [1, T]  int32
    alpha = alpha_ref[...].astype(jnp.float32)    # [C, 1]
    num_classes, num_cols = x.shape

    # Global column index of every lane (unclamped): masks the ragged tail of
    # the last real tile and any fully out-of-range, clamped tile.
    col0 = (core * tiles_per_core + tile) * tile_n
    col = col0 + jax.lax.broadcasted_iota(jnp.int32, (1, num_cols), 1)   # [1, T]
    valid = col < n_total                                                # [1, T]
    # Invalid columns get target -1 so the one-hot never fires there.
    # TODO(synk): PyTorch CrossEntropyLoss raises on out-of-range targets;
    # here they are silently dropped from the weighted mean.
    tgt_m = jnp.where(valid, tgt, -1)                                    # [1, T]

    # Column-wise (per-example) log-softmax pieces: one exp per logit, one log
    # per example; no full [C, T] logp is materialized.
    m = jnp.max(x, axis=0, keepdims=True)                                # [1, T]
    shifted = x - m                                                      # [C, T]
    lse = jnp.log(jnp.sum(jnp.exp(shifted), axis=0, keepdims=True))      # [1, T]

    # Fused one-hot gather (class axis = sublane axis).
    classes = jax.lax.broadcasted_iota(jnp.int32, (num_classes, num_cols), 0)
    hit = classes == tgt_m                                               # [C, T]
    w_col = jnp.sum(jnp.where(hit, alpha, 0.0), axis=0, keepdims=True)         # [1, T]
    shifted_t = jnp.sum(jnp.where(hit, shifted, 0.0), axis=0, keepdims=True)   # [1, T]
    # where (not multiply) so garbage in OOB columns cannot inject NaN/Inf.
    wnll_col = jnp.where(valid, w_col * (lse - shifted_t), 0.0)                # [1, T]

    # Per-lane partial sums, accumulated across the "arbitrary" tile axis into
    # this core block's resident output block.
    out_ref[0, 0:1, :] += wnll_col   # running  sum_i alpha[t_i] * nll_i  (per lane)
    out_ref[0, 1:2, :] += w_col      # running  sum_i alpha[t_i]          (per lane)


def _apply_focal(ce, gamma):
    pt = jnp.exp(-ce)
    one_minus_pt = 1.0 - pt
    g = float(gamma)
    if g.is_integer() and g >= 0:
        focal = jnp.float32(1.0)
        for _ in range(int(g)):          # trace-time unroll; no pow/log in hot path
            focal = focal * one_minus_pt
    else:
        focal = one_minus_pt ** g
    return focal * ce


def _weighted_ce_small(logits2d, targets, alpha):
    """Plain-JAX weighted cross entropy (small-N fast path and reference)."""
    x = logits2d.astype(jnp.float32)
    t = targets.reshape(-1).astype(jnp.int32)
    logp = jax.nn.log_softmax(x, axis=-1)
    nll = -jnp.take_along_axis(logp, t[:, None], axis=-1)[:, 0]
    w = alpha.astype(jnp.float32).reshape(-1)[t]
    return jnp.sum(w * nll) / jnp.sum(w)


def focal_loss(intent_logits, targets, alpha, gamma=2, *, max_tile_n=_MAX_TILE_N):
    """intent_logits: [..., C] float (any dtype); targets: [...] int; alpha: [C]."""
    c = alpha.shape[-1]
    logits2d = intent_logits.reshape(-1, c)            # [N, C], native dtype
    n = logits2d.shape[0]

    # NOTE: if sum(alpha[targets]) == 0 the result is NaN, matching PyTorch.
    if n < _SMALL_N:
        # Tiny batches: kernel launch + relayout overhead dwarfs the work.
        return _apply_focal(_weighted_ce_small(logits2d, targets, alpha), gamma)

    # Lane-dense layout: classes -> sublanes, examples -> lanes.
    logits_cn = logits2d.T                              # [C, N]  (see TODO above)
    tgt_1n = targets.reshape(1, -1).astype(jnp.int32)   # [1, N]
    alpha_c1 = alpha.reshape(c, 1)                      # [C, 1]

    tile_n = _pick_tile_n(n, c, logits2d.dtype.itemsize, max_tile_n)
    n_tiles = int(pl.cdiv(n, tile_n))
    tiles_per_core = int(pl.cdiv(n_tiles, _NUM_CORE_BLOCKS))

    def col_map(ci, ti):
        # Clamp fully out-of-range tiles onto the last real tile; the kernel
        # masks their contribution via the unclamped global column index.
        return (0, jnp.minimum(ci * tiles_per_core + ti, n_tiles - 1))

    kernel = functools.partial(
        _focal_partials_kernel,
        n_total=n, tile_n=tile_n, tiles_per_core=tiles_per_core)

    vmem_cap = _vmem_capacity_bytes()
    vmem_limit = min(int(vmem_cap * 0.8), 100 * 1024 * 1024)

    partials = pl.pallas_call(
        kernel,
        out_shape=jax.ShapeDtypeStruct((_NUM_CORE_BLOCKS, 2, tile_n), jnp.float32),
        grid=(_NUM_CORE_BLOCKS, tiles_per_core),
        in_specs=[
            pl.BlockSpec((c, tile_n), col_map),              # logits  [C, TILE_N]
            pl.BlockSpec((1, tile_n), col_map),              # targets [1, TILE_N]
            pl.BlockSpec((c, 1), lambda ci, ti: (0, 0)),     # alpha   (resident)
        ],
        out_specs=pl.BlockSpec((1, 2, tile_n), lambda ci, ti: (ci, 0, 0)),
        compiler_params=pltpu.CompilerParams(
            dimension_semantics=("parallel", "arbitrary"),
            vmem_limit_bytes=vmem_limit,
        ),
    )(logits_cn, tgt_1n, alpha_c1)

    # Finalize in the wrapper (cross-core reduction + ce -> pt -> focal).
    wnll = jnp.sum(partials[:, 0, :])
    wsum = jnp.sum(partials[:, 1, :])
    ce = wnll / wsum
    return _apply_focal(ce, gamma)


def _focal_loss_ref(intent_logits, targets, alpha, gamma=2):
    """Pure-JAX reference matching PyTorch semantics, for verification."""
    c = alpha.shape[-1]
    return _apply_focal(
        _weighted_ce_small(intent_logits.reshape(-1, c), targets, alpha), gamma)


if __name__ == "__main__":
    key = jax.random.PRNGKey(0)
    k1, k2, k3, k4, k5, k6 = jax.random.split(key, 6)

    # 1) Tiny batch -> small-N pure-JAX fast path.
    c1 = 8
    alpha1 = jnp.linspace(0.5, 1.5, c1, dtype=jnp.float32)
    x1 = jax.random.normal(k1, (16, c1), dtype=jnp.float32)
    t1 = jax.random.randint(k2, (16,), 0, c1, dtype=jnp.int32)
    l1 = jax.block_until_ready(focal_loss(x1, t1, alpha1, gamma=2))
    r1 = _focal_loss_ref(x1, t1, alpha1, gamma=2)
    assert jnp.allclose(l1, r1, rtol=1e-5, atol=1e-6), (l1, r1)

    # 2) f32, ragged N (not tile aligned), tiny forced tile so multi-tile
    #    accumulation, the clamped OOB tile and both core blocks all run.
    n2, c2 = 4100, 8
    alpha2 = jnp.linspace(0.5, 1.5, c2, dtype=jnp.float32)
    x2 = jax.random.normal(k3, (n2, c2), dtype=jnp.float32)
    t2 = jax.random.randint(k4, (n2,), 0, c2, dtype=jnp.int32)
    l2 = jax.block_until_ready(focal_loss(x2, t2, alpha2, gamma=2, max_tile_n=1024))
    r2 = _focal_loss_ref(x2, t2, alpha2, gamma=2)
    assert jnp.allclose(l2, r2, rtol=1e-5, atol=1e-6), (l2, r2)

    # 3) bf16 logits, C=10 (crosses a sublane tile), default tile selection.
    n3, c3 = 6272, 10
    alpha3 = jnp.linspace(0.4, 1.6, c3, dtype=jnp.float32)
    x3 = jax.random.normal(k5, (n3, c3), dtype=jnp.bfloat16)
    t3 = jax.random.randint(k6, (n3,), 0, c3, dtype=jnp.int32)
    l3 = jax.block_until_ready(focal_loss(x3, t3, alpha3, gamma=3))
    r3 = _focal_loss_ref(x3, t3, alpha3, gamma=3)
    assert jnp.allclose(l3, r3, rtol=1e-4, atol=1e-5), (l3, r3)

    print("KERNEL_OK")
</pallas_src>

<mosaic_0001>
module attributes {stable_mosaic.version = 11 : i64} {
  func.func @_focal_partials_kernel(%arg0: i32, %arg1: i32, %arg2: memref<8x1024xf32, #tpu.memory_space<vmem>>, %arg3: memref<1x1024xi32, #tpu.memory_space<vmem>>, %arg4: memref<8x1xf32, #tpu.memory_space<vmem>>, %arg5: memref<1x2x1024xf32, #tpu.memory_space<vmem>>) attributes {dimension_semantics = [#tpu.dimension_semantics<parallel>, #tpu.dimension_semantics<arbitrary>], iteration_bounds = array<i64: 2, 3>, scalar_prefetch = 0 : i64, scratch_operands = 0 : i64, tpu.core_type = #tpu.core_type<tc>, window_params = [{transform_indices = @transform_0, window_bounds = array<i64: 8, 1024>}, {transform_indices = @transform_1, window_bounds = array<i64: 1, 1024>}, {pipeline_mode = #tpu.pipeline_mode<synchronous>, transform_indices = @transform_2, window_bounds = array<i64: 8, 1>}, {transform_indices = @transform_3, window_bounds = array<i64: 1, 2, 1024>}]} {
    %c0_i32 = arith.constant 0 : i32
    %0 = arith.cmpi eq, %arg1, %c0_i32 : i32
    %1 = arith.extui %0 : i1 to i32
    %c0_i32_0 = arith.constant 0 : i32
    %2 = arith.cmpi ne, %1, %c0_i32_0 : i32
    scf.if %2 {
      %cst_23 = arith.constant 0.000000e+00 : f32
      %53 = vector.broadcast %cst_23 : f32 to vector<1x2x1024xf32>
      %c0_24 = arith.constant 0 : index
      %c0_25 = arith.constant 0 : index
      %c0_26 = arith.constant 0 : index
      %54 = vector.load %arg5[%c0_24, %c0_25, %c0_26] : memref<1x2x1024xf32, #tpu.memory_space<vmem>>, vector<1x2x1024xf32>
      tpu.vector_store %arg5[%c0_24, %c0_25, %c0_26], %53 {strides = array<i32>} : memref<1x2x1024xf32, #tpu.memory_space<vmem>>, vector<1x2x1024xf32>,
    } else {
    }
    %c0 = arith.constant 0 : index
    %c0_1 = arith.constant 0 : index
    %3 = vector.load %arg2[%c0, %c0_1] : memref<8x1024xf32, #tpu.memory_space<vmem>>, vector<8x1024xf32>
    %c0_2 = arith.constant 0 : index
    %c0_3 = arith.constant 0 : index
    %4 = vector.load %arg3[%c0_2, %c0_3] : memref<1x1024xi32, #tpu.memory_space<vmem>>, vector<1x1024xi32>
    %c0_4 = arith.constant 0 : index
    %c0_5 = arith.constant 0 : index
    %5 = vector.load %arg4[%c0_4, %c0_5] : memref<8x1xf32, #tpu.memory_space<vmem>>, vector<8x1xf32>
    %c3_i32 = arith.constant 3 : i32
    %6 = arith.muli %arg0, %c3_i32 : i32
    %7 = arith.addi %6, %arg1 : i32
    %c1024_i32 = arith.constant 1024 : i32
    %8 = arith.muli %7, %c1024_i32 : i32
    %9 = tpu.iota {dimensions = array<i32: 1>} : vector<1x1024xi32>
    %10 = vector.broadcast %8 : i32 to vector<1x1024xi32>
    %11 = arith.addi %10, %9 : vector<1x1024xi32>
    %c4100_i32 = arith.constant 4100 : i32
    %12 = vector.broadcast %c4100_i32 : i32 to vector<1x1024xi32>
    %13 = arith.cmpi slt, %11, %12 : vector<1x1024xi32>
    %c-1_i32 = arith.constant -1 : i32
    %14 = vector.broadcast %c-1_i32 : i32 to vector<1x1024xi32>
    %15 = arith.select %13, %4, %14 : vector<1x1024xi1>, vector<1x1024xi32>
    %cst = arith.constant dense<0xFF800000> : vector<1024xf32>
    %16 = vector.multi_reduction <maximumf>, %3, %cst [0] : vector<8x1024xf32> to vector<1024xf32>
    %17 = vector.shape_cast %16 : vector<1024xf32> to vector<1x1024xf32>
    %18 = vector.broadcast %17 : vector<1x1024xf32> to vector<8x1024xf32>
    %19 = arith.subf %3, %18 : vector<8x1024xf32>
    %20 = math.exp %19 : vector<8x1024xf32>
    %cst_6 = arith.constant dense<0.000000e+00> : vector<1024xf32>
    %21 = vector.multi_reduction <add>, %20, %cst_6 [0] : vector<8x1024xf32> to vector<1024xf32>
    %22 = vector.shape_cast %21 : vector<1024xf32> to vector<1x1024xf32>
    %23 = math.log %22 : vector<1x1024xf32>
    %24 = tpu.iota {dimensions = array<i32: 0>} : vector<8x1024xi32>
    %25 = vector.broadcast %15 : vector<1x1024xi32> to vector<8x1024xi32>
    %26 = arith.cmpi eq, %24, %25 : vector<8x1024xi32>
    %cst_7 = arith.constant 0.000000e+00 : f32
    %27 = vector.shape_cast %5 : vector<8x1xf32> to vector<8x1xf32>
    %28 = vector.broadcast %27 : vector<8x1xf32> to vector<8x1024xf32>
    %29 = vector.broadcast %cst_7 : f32 to vector<8x1024xf32>
    %30 = arith.select %26, %28, %29 : vector<8x1024xi1>, vector<8x1024xf32>
    %cst_8 = arith.constant dense<0.000000e+00> : vector<1024xf32>
    %31 = vector.multi_reduction <add>, %30, %cst_8 [0] : vector<8x1024xf32> to vector<1024xf32>
    %32 = vector.shape_cast %31 : vector<1024xf32> to vector<1x1024xf32>
    %cst_9 = arith.constant 0.000000e+00 : f32
    %33 = vector.broadcast %cst_9 : f32 to vector<8x1024xf32>
    %34 = arith.select %26, %19, %33 : vector<8x1024xi1>, vector<8x1024xf32>
    %cst_10 = arith.constant dense<0.000000e+00> : vector<1024xf32>
    %35 = vector.multi_reduction <add>, %34, %cst_10 [0] : vector<8x1024xf32> to vector<1024xf32>
    %36 = vector.shape_cast %35 : vector<1024xf32> to vector<1x1024xf32>
    %37 = arith.subf %23, %36 : vector<1x1024xf32>
    %38 = arith.mulf %32, %37 : vector<1x1024xf32>
    %cst_11 = arith.constant 0.000000e+00 : f32
    %39 = vector.broadcast %cst_11 : f32 to vector<1x1024xf32>
    %40 = arith.select %13, %38, %39 : vector<1x1024xi1>, vector<1x1024xf32>
    %c0_12 = arith.constant 0 : index
    %c0_13 = arith.constant 0 : index
    %c0_14 = arith.constant 0 : index
    %41 = vector.load %arg5[%c0_12, %c0_13, %c0_14] : memref<1x2x1024xf32, #tpu.memory_space<vmem>>, vector<1x1x1024xf32>
    %42 = vector.shape_cast %41 : vector<1x1x1024xf32> to vector<1x1024xf32>
    %43 = arith.addf %42, %40 : vector<1x1024xf32>
    %c0_15 = arith.constant 0 : index
    %c0_16 = arith.constant 0 : index
    %c0_17 = arith.constant 0 : index
    %44 = vector.load %arg5[%c0_15, %c0_16, %c0_17] : memref<1x2x1024xf32, #tpu.memory_space<vmem>>, vector<1x1x1024xf32>
    %45 = vector.shape_cast %44 : vector<1x1x1024xf32> to vector<1x1024xf32>
    %46 = vector.shape_cast %43 : vector<1x1024xf32> to vector<1x1x1024xf32>
    tpu.vector_store %arg5[%c0_15, %c0_16, %c0_17], %46 {strides = array<i32>} : memref<1x2x1024xf32, #tpu.memory_space<vmem>>, vector<1x1x1024xf32>,
    %c0_18 = arith.constant 0 : index
    %c1 = arith.constant 1 : index
    %c0_19 = arith.constant 0 : index
    %47 = vector.load %arg5[%c0_18, %c1, %c0_19] : memref<1x2x1024xf32, #tpu.memory_space<vmem>>, vector<1x1x1024xf32>
    %48 = vector.shape_cast %47 : vector<1x1x1024xf32> to vector<1x1024xf32>
    %49 = arith.addf %48, %32 : vector<1x1024xf32>
    %c0_20 = arith.constant 0 : index
    %c1_21 = arith.constant 1 : index
    %c0_22 = arith.constant 0 : index
    %50 = vector.load %arg5[%c0_20, %c1_21, %c0_22] : memref<1x2x1024xf32, #tpu.memory_space<vmem>>, vector<1x1x1024xf32>
    %51 = vector.shape_cast %50 : vector<1x1x1024xf32> to vector<1x1024xf32>
    %52 = vector.shape_cast %49 : vector<1x1024xf32> to vector<1x1x1024xf32>
    tpu.vector_store %arg5[%c0_20, %c1_21, %c0_22], %52 {strides = array<i32>} : memref<1x2x1024xf32, #tpu.memory_space<vmem>>, vector<1x1x1024xf32>,
    return
  }
  func.func @transform_0(%arg0: i32, %arg1: i32) -> (i32, i32) {
    %c3_i32 = arith.constant 3 : i32
    %0 = arith.muli %arg0, %c3_i32 : i32
    %1 = arith.addi %0, %arg1 : i32
    %c4_i32 = arith.constant 4 : i32
    %2 = arith.minsi %1, %c4_i32 : i32
    %c0_i32 = arith.constant 0 : i32
    %c0_i32_0 = arith.constant 0 : i32
    return %c0_i32, %2 : i32, i32
  }
  func.func @transform_1(%arg0: i32, %arg1: i32) -> (i32, i32) {
    %c3_i32 = arith.constant 3 : i32
    %0 = arith.muli %arg0, %c3_i32 : i32
    %1 = arith.addi %0, %arg1 : i32
    %c4_i32 = arith.constant 4 : i32
    %2 = arith.minsi %1, %c4_i32 : i32
    %c0_i32 = arith.constant 0 : i32
    %c0_i32_0 = arith.constant 0 : i32
    return %c0_i32, %2 : i32, i32
  }
  func.func @transform_2(%arg0: i32, %arg1: i32) -> (i32, i32) {
    %c0_i32 = arith.constant 0 : i32
    %c0_i32_0 = arith.constant 0 : i32
    %c0_i32_1 = arith.constant 0 : i32
    return %c0_i32, %c0_i32_0 : i32, i32
  }
  func.func @transform_3(%arg0: i32, %arg1: i32) -> (i32, i32, i32) {
    %c0_i32 = arith.constant 0 : i32
    %c0_i32_0 = arith.constant 0 : i32
    %c0_i32_1 = arith.constant 0 : i32
    return %arg0, %c0_i32, %c0_i32_0 : i32, i32, i32
  }
}

</mosaic_0001>

<bundles_post_ra>
// kernel: tpu_custom_call.1
= control target key start
LH: loop header
LB: loop body
LE: loop exit
PB: predicated region body
PF: predicated region fallthrough
CT: control target
= control target key end

     0   :  { %8 = vsyncpa [#allocation3], 0  ;;  %s1876_s0 = inlined_call_operand.hbm [shape: f32[8,4100], index: 0, kind: input, shape index: {}]   ;;  %s1877_s1 = inlined_call_operand.hbm [shape: s32[1,4100], index: 1, kind: input, shape index: {}]   ;;  %s1878_s2 = inlined_call_operand.vmem [shape: f32[8,1], index: 2, kind: input, shape index: {}]   ;;  %s1879_s3 = inlined_call_operand.hbm [shape: f32[2,2,1024], index: 3, kind: output, shape index: {}]  }
   0x1   :  { %10 = vsyncpa [#allocation3 + $0x1], 0 }
   0x2   :  { %11 = vsyncpa [#allocation6], 0 }
   0x3   :  { %13 = vsyncpa [#allocation6 + $0x1], 0 }
   0x4   :  { %14 = vsyncpa [#allocation4], 0 }
   0x5   :  { %16 = vsyncpa [#allocation4 + $0x1], 0  ;;  %s1311_s12 = smov 0   ;;  %s1313_s13 = smov 0  }
   0x6   :  { %s1315_s14 = smov 0   ;;  %s1317_s15 = smov 0  }
   0x7   :  { %s1319_s16 = smov 0   ;;  %s1321_s17 = smov 0  }
   0x8   :  { %s1323_s18 = smov 0   ;;  %s1325_s19 = smov 0  }
   0x9   :  { %s1327_s20 = smov 0   ;;  %s1329_s21 = smov 0  }
   0xa   :  { %s1331_s22 = smov 0  }
   0xb LB: > { %1887 = sst [smem:[#allocation11_spill]] %s1275_s20  ;;  %s936_s23 = sadd.s32 4294967295, %s1283_s22   ;;  %s1283_s22 = sphi %s1331_s22, %s22_s22   ;;  %s1279_s21 = sphi %s1329_s21, %s1927_s21   ;;  %s1275_s20 = sphi %s1327_s20, %s1926_s20   ;;  %s1271_s19 = sphi %s1325_s19, %s1925_s19   ;;  %s1267_s18 = sphi %s1323_s18, %s1924_s18   ;;  %s1263_s17 = sphi %s1321_s17, %s1933_s17   ;;  %s1259_s16 = sphi %s1319_s16, %s1932_s16   ;;  %s1255_s15 = sphi %s1317_s15, %s1931_s15   ;;  %s1251_s14 = sphi %s1315_s14, %s1930_s14   ;;  %s1247_s13 = sphi %s1313_s13, %s1929_s13   ;;  %s1243_s12 = sphi %s1311_s12, %s1928_s12  }
   0xc   : > { %1888 = sst [smem:[#allocation12_spill]] %s1279_s21  ;;  %s937_s24 = sadd.s32 4294967294, %s1283_s22  }
   0xd   : > { %s31_s25 = sadd.s32 1, %s1275_s20  ;;  %s34_s26 = sadd.s32 1, %s1279_s21 }
   0xe   : > { %p32_p0 = scmp.ge.s32.totalorder %s31_s25, 3  ;;  %s38_s27 = smul.u32 3, %s1279_s21 }
   0xf   : > { %s49_s28 = sadd.s32 1, %s1263_s17  ;;  %p56_p1 = scmp.ne.s32.totalorder %s1263_s17, %s1259_s16 }
  0x10   : > { %s1935_s25 = smov (%p32_p0, %s31_s25), 0  ;;  %s1937_s26 = smov (!%p32_p0, %s34_s26), %s1279_s21 }
  0x11   : > { %1889 = sst [smem:[#allocation13_spill]] %s1935_s25  ;;  %s39_s29 = sadd.s32 %s1275_s20, %s38_s27 }
  0x12   : > { %p57_p2 = scmp.eq.s32.totalorder %s1283_s22, 0  ;;  %p36_p3 = scmp.ge.s32.totalorder %s1937_s26, 2 }
  0x13   : > { %p40_p4 = scmp.lt.s32.totalorder %s39_s29, 4  ;;  %p62_p6 = scmp.ne.s32.totalorder %s1259_s16, %s1255_s15 }
  0x14   : > { %p1379_p5 = por %p57_p2, %p56_p1  ;;  %s1939_s26 = smov (%p36_p3, %s1937_s26), 0 }
  0x15   : > { %1891 = sst [smem:[#allocation14_spill]] %s1939_s26  ;;  %s1941_s29 = smov (!%p40_p4, %s39_s29), 4 }
  0x16   : > { %s1890_s30 = scalar_select %p1379_p5, 1, 0 }
  0x17   : > { %s42_s4 = smul.u32 3, %s1939_s26  ;;  %p63_p7 = scmp.eq.s32.totalorder %s936_s23, 0 }
  0x18   : > { %s127_s5 = ssub.s32 %s1279_s21, %s1939_s26  ;;  %s130_s6 = sadd.s32 1, %s1251_s14 }
  0x19   : > { %s43_s7 = sadd.s32 %s42_s4, %s1935_s25  ;;  %p1394_p8 = por %p63_p7, %p62_p6 }
  0x1a   : > { %p44_p9 = scmp.lt.s32.totalorder %s43_s7, 4  ;;  %p128_p10 = scmp.eq.s32.totalorder %s127_s5, 0 }
  0x1b   : > { %s1892_s8 = scalar_select %p1394_p8, 1, 0 }
  0x1c   : > { %p140_p11 = scmp.ne.s32.totalorder %s1251_s14, %s1247_s13  ;;  %p141_p12 = scmp.eq.s32.totalorder %s936_s23, 5 }
  0x1d   : > { %s1943_s7 = smov (!%p44_p9, %s43_s7), 4  ;;  %p146_p1 = scmp.ne.s32.totalorder %s1247_s13, %s1243_s12 }
  0x1e   : > { %s1401_s9 = scalar_select %p128_p10, %s1251_s14, %s130_s6  }
  0x1f   : > { %s46_s10 = ssub.s32 %s1941_s29, %s1943_s7  ;;  %p1404_p13 = por %p141_p12, %p140_p11 }
  0x20   : > { %1893 = sst [smem:[#allocation15_spill]] %s1401_s9  ;;  %p47_p0 = scmp.eq.s32.totalorder %s46_s10, 0 }
  0x21   : > { %s1894_s11 = scalar_select %p1404_p13, 1, 0 }
  0x22   : > { %p147_p2 = scmp.eq.s32.totalorder %s937_s24, 5  ;;  %p939_p4 = scmp.ge.s32.totalorder %s1283_s22, 6 }
  0x23   : > { %s1415_s15 = scalar_select %p47_p0, %s1263_s17, %s49_s28  }
  0x24   : > { %p1417_p3 = por %p147_p2, %p146_p1  ;;  %166 = sbr.rel (%p939_p4) target bundleno = 113 (0x71), region = 20 }
  0x25   : > { %1895 = sst [smem:[#allocation16_spill]] %s1415_s15 }
  0x26   : > { %s1896_s27 = scalar_select %p1417_p3, 1, 0 }
  0x2b   : > { %169 = sbr.rel (!%p1379_p5) target bundleno = 77 (0x4d), region = 24  ;;  %s170_s23 = sand.u32 (%p1379_p5), 1, %s1263_s17  }
  0x2c   : > { %s941_s4 = sshll.u32 (%p1379_p5), %s1941_s29, 3  ;;  %s940_s5 = sshll.u32 (%p1379_p5), %s170_s23, 6 }
  0x2d   : > { %s180_s6 = ssub.s32 (%p1379_p5), 33, %s941_s4  ;;  %s1429_s7 = scalar_lea.sflag (%p1379_p5), [#allocation3], %s170_s23 }
  0x2e   : > { %p181_p6 = scmp.lt.s32.totalorder (%p1379_p5), %s180_s6, 8  ;;  %s174_s10 = scalar_lea.vmem (%p1379_p5), [#allocation2], %s940_s5 }
  0x32   : > { %s1945_s6 = smov (!%p181_p6, %s180_s6), 8 }
  0x33   : > { %s1426_s24 = sshll.u32 %s1945_s6, 7 }
  0x34   : > { %s185_s28 = ssub.s32 1024, %s1426_s24 }
  0x35   : > { %186 = vsyncadd %s1429_s7, %s185_s28  ;;  %p943_p7 = scmp.ne.s32.totalorder %s1426_s24, 0  ;;  %s965_s26 = sshll.u32 %s1941_s29, 10 }
  0x36   : > { %s1437_s4 = scalar_lea.hbm %s1876_s0, %s965_s26  ;;  %s192_s23 = sshll.u32 %s174_s10, 4  ;;  %s193_s23 = int_to_ptr.vmem [resolvable:$true] %s192_s23 }
  0x37   : > { %s1101_s6 = scalar_lea.hbm %s1437_s4, %s1426_s24  ;;  %s1105_s20 = scalar_lea.hbm %s1876_s0, 4224 }
  0x38   : > { %p1102_p9 = scmp.ne.s32.totalorder %s1437_s4, %s1101_s6  ;;  %p1106_p12 = scmp.lt.u32.totalorder %s1437_s4, %s1876_s0 }
  0x39   : > { %p1107_p0 = scmp.lt.u32.totalorder %s1105_s20, %s1101_s6  ;;  %p1109_p2 = scmp.lt.u32.totalorder %s1101_s6, %s1437_s4 }
  0x3a   : > { %p1103_p10 = pnand %p1102_p9, %p943_p7 }
  0x3b   : > { %p1108_p1 = por %p1107_p0, %p1106_p12 }
  0x3c   : > { %p1104_p11 = pneg %p1103_p10 }
  0x3d   : > { %p1110_p4 = por %p1109_p2, %p1108_p1 }
  0x3f   : > { %p1111_p6 = pnand %p1110_p4, %p1104_p11 }
  0x41   : > { %1114 = shalt.err (!%p1111_p6)
}
  0x42   : > { %s1115_s21 = scalar_lea.vmem %s193_s23, %s1426_s24  ;;  %s1285_s25 = smov [#allocation2]  }
  0x43   : > { %p1116_p3 = scmp.ne.s32.totalorder %s193_s23, %s1115_s21  ;;  %s1119_s26 = sshll.u32 %s1285_s25, 4  ;;  %s1120_s26 = int_to_ptr.vmem [resolvable:$false] %s1119_s26 }
  0x44   : > { %s1121_s10 = scalar_lea.vmem %s1120_s26, 2048  ;;  %p1122_p13 = scmp.lt.s32.totalorder %s193_s23, %s1120_s26 }
  0x45   : > { %p1117_p9 = pnand %p1116_p3, %p943_p7  ;;  %p1123_p8 = scmp.lt.s32.totalorder %s1121_s10, %s1115_s21 }
  0x47   : > { %p1118_p10 = pneg %p1117_p9  ;;  %p1124_p5 = por %p1123_p8, %p1122_p13 }
  0x49   : > { %p1125_p0 = pnand %p1124_p5, %p1118_p10 }
  0x4b   : > { %1128 = shalt.err (!%p1125_p0)
}
  0x4c   : > { %195 = dma.hbm_to_vmem [thread:$0]  (%p943_p7), %s1437_s4, %s1426_s24, %s193_s23, %s1429_s7  }
  0x4d PF: > { %p1897_p11 = scmp.ne.s32.totalorder %s1890_s30, 0 }
  0x4e   : > { %s199_s20 = sand.u32 (%p1897_p11), 1, %s1263_s17   ;;  %s948_s9 = sshll.u32 (%p1897_p11), %s1941_s29, 3 }
  0x4f   : > { %198 = sbr.rel (!%p1897_p11) target bundleno = 113 (0x71), region = 28  ;;  %s947_s15 = sshll.u32 (%p1897_p11), %s199_s20, 3 }
  0x50   : > { %s209_s6 = ssub.s32 (%p1897_p11), 33, %s948_s9  ;;  %s1467_s21 = scalar_lea.sflag (%p1897_p11), [#allocation6], %s199_s20 }
  0x51   : > { %p210_p3 = scmp.lt.s32.totalorder (%p1897_p11), %s209_s6, 8  ;;  %s203_s24 = scalar_lea.vmem (%p1897_p11), [#allocation5], %s947_s15 }
  0x56   : > { %s1947_s6 = smov (!%p210_p3, %s209_s6), 8 }
  0x57   : > { %s1464_s5 = sshll.u32 %s1947_s6, 4 }
  0x58   : > { %s214_s28 = ssub.s32 128, %s1464_s5 }
  0x59   : > { %215 = vsyncadd %s1467_s21, %s214_s28  ;;  %p950_p5 = scmp.ne.s32.totalorder %s1464_s5, 0  ;;  %s966_s30 = sshll.u32 %s1941_s29, 7 }
  0x5a   : > { %s1475_s23 = scalar_lea.hbm %s1877_s1, %s966_s30  ;;  %s220_s25 = sshll.u32 %s203_s24, 4  ;;  %s221_s25 = int_to_ptr.vmem [resolvable:$true] %s220_s25 }
  0x5b   : > { %s1129_s26 = scalar_lea.hbm %s1475_s23, %s1464_s5  ;;  %s1133_s29 = scalar_lea.hbm %s1877_s1, 528 }
  0x5c   : > { %p1130_p8 = scmp.ne.s32.totalorder %s1475_s23, %s1129_s26  ;;  %p1134_p12 = scmp.lt.u32.totalorder %s1475_s23, %s1877_s1 }
  0x5d   : > { %p1135_p1 = scmp.lt.u32.totalorder %s1133_s29, %s1129_s26  ;;  %p1137_p4 = scmp.lt.u32.totalorder %s1129_s26, %s1475_s23 }
  0x5e   : > { %p1131_p13 = pnand %p1130_p8, %p950_p5 }
  0x5f   : > { %p1136_p2 = por %p1135_p1, %p1134_p12 }
  0x60   : > { %p1132_p7 = pneg %p1131_p13 }
  0x61   : > { %p1138_p6 = por %p1137_p4, %p1136_p2 }
  0x63   : > { %p1139_p9 = pnand %p1138_p6, %p1132_p7 }
  0x65   : > { %1142 = shalt.err (!%p1139_p9)
}
  0x66   : > { %s1143_s6 = scalar_lea.vmem %s221_s25, %s1464_s5  ;;  %s1286_s28 = smov [#allocation5]  }
  0x67   : > { %p1144_p10 = scmp.ne.s32.totalorder %s221_s25, %s1143_s6  ;;  %s1147_s24 = sshll.u32 %s1286_s28, 4  ;;  %s1148_s24 = int_to_ptr.vmem [resolvable:$false] %s1147_s24 }
  0x68   : > { %s1149_s30 = scalar_lea.vmem %s1148_s24, 256  ;;  %p1150_p3 = scmp.lt.s32.totalorder %s221_s25, %s1148_s24 }
  0x69   : > { %p1145_p0 = pnand %p1144_p10, %p950_p5  ;;  %p1151_p8 = scmp.lt.s32.totalorder %s1149_s30, %s1143_s6 }
  0x6b   : > { %p1146_p11 = pneg %p1145_p0  ;;  %p1152_p13 = por %p1151_p8, %p1150_p3 }
  0x6d   : > { %p1153_p1 = pnand %p1152_p13, %p1146_p11 }
  0x6f   : > { %1156 = shalt.err (!%p1153_p1)
}
  0x70   : > { %223 = dma.hbm_to_vmem [thread:$0]  (%p950_p5), %s1475_s23, %s1464_s5, %s221_s25, %s1467_s21  }
  0x71 PF: > { %p952_p7 = scmp.ge.s32.totalorder %s1283_s22, 1  ;;  %p225_p12 = scmp.lt.s32.totalorder %s1283_s22, 7 }
  0x73   : > { %p226_p2 = pnand %p952_p7, %p225_p12 }
  0x74   : > { %s231_s7 = sand.u32 (!%p226_p2), 1, %s1259_s16   ;;  %p1898_p4 = scmp.ne.s32.totalorder (!%p226_p2), %s1892_s8, 0 }
  0x75   : > { %229 = sbr.rel (%p226_p2) target bundleno = 313 (0x139), region = 32  ;;  %s953_s4 = sshll.u32 (!%p226_p2), %s231_s7, 6 }
  0x76   : > { %s232_s26 = scalar_lea.sflag (!%p226_p2), [#allocation3], %s231_s7  ;;  %s1501_s10 = scalar_lea.vmem (!%p226_p2), [#allocation2], %s953_s4 }
  0x7c   : > { %1230 = dma.done.wait (%p1898_p4), %s232_s26, 1024  }
  0x7d   : > { %1232 = vsyncadd (%p1898_p4), %s232_s26, 4294966272  ;;  %s954_s5 = sshll.u32 %s231_s7, 3  ;;  %s241_s21 = scalar_lea.sflag [#allocation6], %s231_s7 }
  0x7e   : > { %s1507_s23 = scalar_lea.vmem [#allocation5], %s954_s5 }
  0x7f   : > { %1234 = dma.done.wait (%p1898_p4), %s241_s21, 128  }
  0x80   : > { %1236 = vsyncadd (%p1898_p4), %s241_s21, 4294967168  ;;  %s269_s25 = sand.u32 1, %s1247_s13   ;;  %p956_p5 = scmp.ne.s32.totalorder %s1267_s18, 0 }
  0x81   : > { %s955_s20 = sshll.u32 %s269_s25, 4  ;;  %v1287_v0 = vmov (!%p956_p5), 0.0  }
  0x82   : > { %s1516_s29 = scalar_lea.vmem [#allocation7], %s955_s20  ;;  %293 = sbr.rel (%p956_p5) target bundleno = 137 (0x89), region = 44 }
  0x83   : > { %294 = vst [vmem:[%s1516_s29] sm:$0xff] (!%p956_p5), %v1287_v0  ;;  %295 = vst [vmem:[%s1516_s29 + $0x8] sm:$0xff] (!%p956_p5), %v1287_v0 }
  0x89 PF: > { %v305_v1 = vld [vmem:[%s1878_s2] sm:$0xff]  ;;  %v1288_v2 = vmov 0   ;;  %v297_v4 = vld [vmem:[%s1501_s10 + $0x8] sm:$0xff]  ;;  %v298_v5 = vld [vmem:[%s1501_s10 + $0x10] sm:$0xff]  ;;  %s306_s8 = smul.u32 3, %s1271_s19  ;;  %v309_v61 = vlaneseq  ;;  %s832_s24 = sshll.u32 %s1516_s29, 4  ;;  %s1812_s24 = int_to_ptr.vmem [resolvable:$true] %s832_s24 }
  0x8a   : > { %1068 = vset.pattern.permute.xlu0 %v1288_v2  ;;  %v296_v3 = vld [vmem:[%s1501_s10] sm:$0xff]  ;;  %v299_v6 = vld [vmem:[%s1501_s10 + $0x18] sm:$0xff]  ;;  %v381_v9 = vrot.slane %v297_v4, 4  ;;  %v301_v10 = vld [vmem:[%s1501_s10 + $0x28] sm:$0xff]  ;;  %v387_v11 = vrot.slane %v298_v5, 4  ;;  %s818_s26 = scalar_lea.sflag [#allocation4], %s269_s25 }
  0x8b   : > { %555 = vperm.xlu0 %1068, %v305_v1   ;;  %v375_v7 = vrot.slane %v296_v3, 4  ;;  %v300_v8 = vld [vmem:[%s1501_s10 + $0x20] sm:$0xff]  ;;  %v302_v12 = vld [vmem:[%s1501_s10 + $0x30] sm:$0xff]  ;;  %v393_v13 = vrot.slane %v299_v6, 4  ;;  %v303_v14 = vld [vmem:[%s1501_s10 + $0x38] sm:$0xff]  ;;  %v405_v18 = vrot.slane %v301_v10, 4  ;;  %s307_s6 = sadd.s32 %s1267_s18, %s306_s8 }
  0x8c   : > { %v399_v16 = vrot.slane %v300_v8, 4  ;;  %v382_v17 = vmax.f32 %v297_v4, %v381_v9  ;;  %v388_v19 = vmax.f32 %v298_v5, %v387_v11  ;;  %v411_v20 = vrot.slane %v302_v12, 4  ;;  %s957_s28 = sshll.u32 %s307_s6, 10  ;;  %s967_s18 = sshll.u32 %s1271_s19, 8 }
  0x8d   : > { %v376_v15 = vmax.f32 %v296_v3, %v375_v7  ;;  %v394_v21 = vmax.f32 %v299_v6, %v393_v13  ;;  %v417_v22 = vrot.slane %v303_v14, 4  ;;  %v406_v26 = vmax.f32 %v301_v10, %v405_v18  ;;  %s1810_s4 = scalar_lea.hbm %s1879_s3, %s967_s18  ;;  %s1157_s10 = scalar_lea.vmem %s1812_s24, 256 }
  0x8e   : > { %v400_v24 = vmax.f32 %v300_v8, %v399_v16  ;;  %v383_v25 = vrot.slane %v382_v17, 2  ;;  %v389_v27 = vrot.slane %v388_v19, 2  ;;  %v412_v28 = vmax.f32 %v302_v12, %v411_v20  ;;  %p1158_p6 = scmp.ne.s32.totalorder %s1812_s24, %s1157_s10  ;;  %p1920_p9 = scmp.ne.s32.totalorder %s1894_s11, 0 }
  0x8f   : > { %v377_v23 = vrot.slane %v376_v15, 2  ;;  %v395_v29 = vrot.slane %v394_v21, 2  ;;  %v418_v30 = vmax.f32 %v303_v14, %v417_v22  ;;  %v407_v34 = vrot.slane %v406_v26, 2  ;;  %s1290_s19 = smov [#allocation7]  }
  0x90   : > { %v401_v32 = vrot.slane %v400_v24, 2  ;;  %v384_v33 = vmax.f32 %v382_v17, %v383_v25  ;;  %v390_v35 = vmax.f32 %v388_v19, %v389_v27  ;;  %v413_v36 = vrot.slane %v412_v28, 2  ;;  %p1159_p10 = pnand %p1158_p6, %p1920_p9  ;;  %s1161_s5 = sshll.u32 %s1290_s19, 4  ;;  %s1162_s5 = int_to_ptr.vmem [resolvable:$false] %s1161_s5 }
  0x91   : > { %v378_v31 = vmax.f32 %v376_v15, %v377_v23  ;;  %v396_v37 = vmax.f32 %v394_v21, %v395_v29  ;;  %v419_v38 = vrot.slane %v418_v30, 2  ;;  %v408_v42 = vmax.f32 %v406_v26, %v407_v34  ;;  %s1163_s21 = scalar_lea.vmem %s1162_s5, 512  ;;  %p1164_p11 = scmp.lt.s32.totalorder %s1812_s24, %s1162_s5 }
  0x92   : > { %v402_v40 = vmax.f32 %v400_v24, %v401_v32  ;;  %v385_v41 = vrot.slane %v384_v33, 1  ;;  %v391_v43 = vrot.slane %v390_v35, 1  ;;  %v414_v44 = vmax.f32 %v412_v28, %v413_v36  ;;  %p1160_p0 = pneg %p1159_p10  ;;  %p1165_p3 = scmp.lt.s32.totalorder %s1163_s21, %s1157_s10 }
  0x93   : > { %v379_v39 = vrot.slane %v378_v31, 1  ;;  %v397_v45 = vrot.slane %v396_v37, 1  ;;  %v420_v46 = vmax.f32 %v418_v30, %v419_v38  ;;  %v409_v50 = vrot.slane %v408_v42, 1 }
  0x94   : > { %v403_v48 = vrot.slane %v402_v40, 1  ;;  %v386_v49 = vmax.f32 %v384_v33, %v385_v41  ;;  %v392_v51 = vmax.f32 %v390_v35, %v391_v43  ;;  %v415_v52 = vrot.slane %v414_v44, 1  ;;  %p1166_p8 = por %p1165_p3, %p1164_p11 }
  0x95   : > { %v380_v47 = vmax.f32 %v378_v31, %v379_v39  ;;  %v398_v53 = vmax.f32 %v396_v37, %v397_v45  ;;  %v421_v54 = vrot.slane %v420_v46, 1  ;;  %v410_v57 = vmax.f32 %v408_v42, %v409_v50  ;;  %v304_v31 = vld [vmem:[%s1507_s23] sm:$0xff] }
  0x96   : > { %v404_v55 = vmax.f32 %v402_v40, %v403_v48  ;;  %v1534_v58 = vsub.f32 %v297_v4, %v386_v49  ;;  %v416_v59 = vmax.f32 %v414_v44, %v415_v52  ;;  %v1537_v60 = vsub.f32 %v298_v5, %v392_v51  ;;  %p1167_p13 = pnand %p1166_p8, %p1160_p0 }
  0x97   : > { %v1532_v56 = vsub.f32 %v296_v3, %v380_v47  ;;  %v422_v62 = vmax.f32 %v420_v46, %v421_v54  ;;  %v1539_v63 = vsub.f32 %v299_v6, %v398_v53  ;;  %v1544_v2 = vsub.f32 %v301_v10, %v410_v57 }
  0x98   : > { %v1541_v0 = vsub.f32 %v300_v8, %v404_v55  ;;  %v433_v3 = vmul.f32 1.442695, %v1534_v58  ;;  %v1548_v7 = vsub.f32 %v302_v12, %v416_v59  ;;  %v435_v4 = vmul.f32 1.442695, %v1537_v60 }
  0x99   : > { %v431_v1 = vmul.f32 1.442695, %v1532_v56  ;;  %v310_v9 = vand.u32 127, %v309_v61  ;;  %v1551_v5 = vsub.f32 %v303_v14, %v422_v62  ;;  %v437_v11 = vmul.f32 1.442695, %v1539_v63 }
  0x9a   : > { %v439_v6 = vmul.f32 1.442695, %v1541_v0  ;;  %v441_v8 = vmul.f32 1.442695, %v1544_v2  ;;  %v443_v10 = vmul.f32 1.442695, %v1548_v7  ;;  %v318_v14 = vstv %s957_s28 }
  0x9b   : > { %1069 = vpow2.f32 %v431_v1  ;;  %v311_v13 = vadd.s32 128, %v310_v9  ;;  %v445_v12 = vmul.f32 1.442695, %v1551_v5  ;;  %v312_v15 = vadd.s32 256, %v310_v9 }
  0x9c   : > { %1071 = vpow2.f32 %v433_v3  ;;  %v313_v16 = vadd.s32 384, %v310_v9  ;;  %v314_v17 = vadd.s32 512, %v310_v9  ;;  %v315_v18 = vadd.s32 640, %v310_v9 }
  0x9d   : > { %1073 = vpow2.f32 %v435_v4  ;;  %v1558_v19 = vshrl.u32 %v309_v61, 7  ;;  %v316_v20 = vadd.s32 768, %v310_v9  ;;  %v317_v21 = vadd.s32 896, %v310_v9 }
  0x9e   : > { %1075 = vpow2.f32 %v437_v11  ;;  %v1560_v22 = vadd.s32 %v318_v14, %v310_v9  ;;  %v1562_v23 = vadd.s32 %v318_v14, %v311_v13  ;;  %v1564_v24 = vadd.s32 %v318_v14, %v312_v15 }
  0x9f   : > { %1077 = vpow2.f32 %v439_v6  ;;  %v1566_v25 = vadd.s32 %v318_v14, %v313_v16  ;;  %v1568_v26 = vadd.s32 %v318_v14, %v314_v17  ;;  %v1570_v27 = vadd.s32 %v318_v14, %v315_v18 }
  0xa0   : > { %1079 = vpow2.f32 %v441_v8  ;;  %v1573_v28 = vsub.s32 0, %v1558_v19  ;;  %v341_v29 = vsub.s32 1, %v1558_v19  ;;  %v1577_v32 = vadd.s32 %v318_v14, %v316_v20 }
  0xa1   : > { %1081 = vpow2.f32 %v443_v10  ;;  %v1579_v33 = vadd.s32 %v318_v14, %v317_v21  ;;  %v345_v34 = vsub.s32 2, %v1558_v19  ;;  %v349_v35 = vsub.s32 3, %v1558_v19 }
  0xa2   : > { %1083 = vpow2.f32 %v445_v12  ;;  %vm327_vm0 = vcmp.lt.s32.totalorder %v1560_v22, 4100  ;;  %vm328_vm1 = vcmp.lt.s32.totalorder %v1562_v23, 4100  ;;  %v353_v37 = vsub.s32 4, %v1558_v19 }
  0xa3   : > { %v357_v38 = vsub.s32 5, %v1558_v19  ;;  %vm329_vm2 = vcmp.lt.s32.totalorder %v1564_v24, 4100  ;;  %vm330_vm3 = vcmp.lt.s32.totalorder %v1566_v25, 4100  ;;  %v361_v40 = vsub.s32 6, %v1558_v19 }
  0xa4   : > { %v365_v41 = vsub.s32 7, %v1558_v19  ;;  %vm331_vm4 = vcmp.lt.s32.totalorder %v1568_v26, 4100  ;;  %v338_v43 = vrot.slane %v304_v31, %v1573_v28  ;;  %v342_v44 = vrot.slane %v304_v31, %v341_v29 }
  0xa5   : > { %v1070_v30 = vpop.eup %1069  ;;  %vm332_vm5 = vcmp.lt.s32.totalorder %v1570_v27, 4100  ;;  %v346_v47 = vrot.slane %v304_v31, %v345_v34  ;;  %v350_v48 = vrot.slane %v304_v31, %v349_v35  ;;  %vm333_vm6 = vcmp.lt.s32.totalorder %v1577_v32, 4100 }
  0xa6   : > { %v1072_v36 = vpop.eup %1071  ;;  %v447_v45 = vrot.slane %v1070_v30, 4  ;;  %v354_v51 = vrot.slane %v304_v31, %v353_v37  ;;  %v358_v52 = vrot.slane %v304_v31, %v357_v38  ;;  %vm334_vm7 = vcmp.lt.s32.totalorder %v1579_v33, 4100 }
  0xa7   : > { %v1074_v39 = vpop.eup %1073  ;;  %v453_v49 = vrot.slane %v1072_v36, 4  ;;  %v362_v55 = vrot.slane %v304_v31, %v361_v40  ;;  %v366_v57 = vrot.slane %v304_v31, %v365_v41  ;;  %v367_v62 = vsel %vm327_vm0, %v338_v43, 4294967295 }
  0xa8   : > { %v1076_v42 = vpop.eup %1075  ;;  %v459_v53 = vrot.slane %v1074_v39, 4  ;;  %v368_v1 = vsel %vm328_vm1, %v342_v44, 4294967295  ;;  %v448_v3 = vadd.f32 %v1070_v30, %v447_v45  ;;  %v369_v9 = vsel %vm329_vm2, %v346_v47, 4294967295 }
  0xa9   : > { %v1078_v46 = vpop.eup %1077  ;;  %v465_v59 = vrot.slane %v1076_v42, 4  ;;  %v370_v11 = vsel %vm330_vm3, %v350_v48, 4294967295  ;;  %v454_v6 = vadd.f32 %v1072_v36, %v453_v49  ;;  %v371_v10 = vsel %vm331_vm4, %v354_v51, 4294967295 }
  0xaa   : > { %v1080_v50 = vpop.eup %1079  ;;  %v471_v4 = vrot.slane %v1078_v46, 4  ;;  %v372_v13 = vsel %vm332_vm5, %v358_v52, 4294967295  ;;  %v460_v12 = vadd.f32 %v1074_v39, %v459_v53  ;;  %v373_v16 = vsel %vm333_vm6, %v362_v55, 4294967295 }
  0xab   : > { %v1082_v54 = vpop.eup %1081  ;;  %v477_v8 = vrot.slane %v1080_v50, 4  ;;  %v374_v14 = vsel %vm334_vm7, %v366_v57, 4294967295  ;;  %v466_v17 = vadd.f32 %v1076_v42, %v465_v59  ;;  %v449_v20 = vrot.slane %v448_v3, 2 }
  0xac   : > { %v1084_v61 = vpop.eup %1083  ;;  %v483_v15 = vrot.slane %v1082_v54, 4  ;;  %v472_v21 = vadd.f32 %v1078_v46, %v471_v4  ;;  %v516_v29 = vrot.slane %v367_v62, %v1573_v28  ;;  %v520_v30 = vrot.slane %v368_v1, %v1573_v28 }
  0xad   : > { %v489_v18 = vrot.slane %v1084_v61, 4  ;;  %v455_v31 = vrot.slane %v454_v6, 2  ;;  %v478_v34 = vadd.f32 %v1080_v50, %v477_v8  ;;  %v524_v35 = vrot.slane %v369_v9, %v1573_v28 }
  0xae   : > { %v528_v36 = vrot.slane %v370_v11, %v1573_v28  ;;  %v461_v37 = vrot.slane %v460_v12, 2  ;;  %v484_v38 = vadd.f32 %v1082_v54, %v483_v15  ;;  %v532_v39 = vrot.slane %v371_v10, %v1573_v28 }
  0xaf   : > { %v536_v40 = vrot.slane %v372_v13, %v1573_v28  ;;  %v467_v41 = vrot.slane %v466_v17, 2  ;;  %v490_v42 = vadd.f32 %v1084_v61, %v489_v18  ;;  %v540_v43 = vrot.slane %v373_v16, %v1573_v28 }
  0xb0   : > { %v544_v44 = vrot.slane %v374_v14, %v1573_v28  ;;  %v450_v45 = vadd.f32 %v449_v20, %v448_v3  ;;  %v473_v46 = vrot.slane %v472_v21, 2  ;;  %vm1621_vm8 = vcmp.eq.s32.totalorder %v1558_v19, %v516_v29 }
  0xb1   : > { %vm1626_vm9 = vcmp.eq.s32.totalorder %v1558_v19, %v520_v30  ;;  %v456_v49 = vadd.f32 %v455_v31, %v454_v6  ;;  %v479_v50 = vrot.slane %v478_v34, 2  ;;  %vm1631_vm10 = vcmp.eq.s32.totalorder %v1558_v19, %v524_v35 }
  0xb2   : > { %vm1636_vm11 = vcmp.eq.s32.totalorder %v1558_v19, %v528_v36  ;;  %v462_v52 = vadd.f32 %v461_v37, %v460_v12  ;;  %v485_v53 = vrot.slane %v484_v38, 2  ;;  %vm1641_vm12 = vcmp.eq.s32.totalorder %v1558_v19, %v532_v39 }
  0xb3   : > { %vm1646_vm13 = vcmp.eq.s32.totalorder %v1558_v19, %v536_v40  ;;  %v468_v57 = vadd.f32 %v467_v41, %v466_v17  ;;  %v491_v59 = vrot.slane %v490_v42, 2  ;;  %vm1651_vm14 = vcmp.eq.s32.totalorder %v1558_v19, %v540_v43 }
  0xb4   : > { %vm1656_vm15 = vcmp.eq.s32.totalorder %v1558_v19, %v544_v44  ;;  %v451_v1 = vrot.slane %v450_v45, 1  ;;  %v474_v3 = vadd.f32 %v473_v46, %v472_v21  ;;  %v614_v4 = vsel %vm1621_vm8, %v1532_v56, 0.0 }
  0xb5   : > { %v615_v9 = vsel %vm1626_vm9, %v1534_v58, 0.0  ;;  %v457_v11 = vrot.slane %v456_v49, 1  ;;  %v480_v6 = vadd.f32 %v479_v50, %v478_v34  ;;  %v616_v8 = vsel %vm1631_vm10, %v1537_v60, 0.0 }
  0xb6   : > { %v617_v10 = vsel %vm1636_vm11, %v1539_v63, 0.0  ;;  %v463_v13 = vrot.slane %v462_v52, 1  ;;  %v486_v12 = vadd.f32 %v485_v53, %v484_v38  ;;  %v618_v56 = vsel %vm1641_vm12, %v1541_v0, 0.0 }
  0xb7   : > { %v619_v58 = vsel %vm1646_vm13, %v1544_v2, 0.0  ;;  %v469_v15 = vrot.slane %v468_v57, 1  ;;  %v492_v16 = vadd.f32 %v491_v59, %v490_v42  ;;  %v622_v14 = vrot.slane %v614_v4, 4 }
  0xb8   : > { %v628_v17 = vrot.slane %v615_v9, 4  ;;  %v452_v18 = vadd.f32 %v451_v1, %v450_v45  ;;  %v475_v60 = vrot.slane %v474_v3, 1  ;;  %v620_v63 = vsel %vm1651_vm14, %v1548_v7, 0.0 }
  0xb9   : > { %v621_v20 = vsel %vm1656_vm15, %v1551_v5, 0.0  ;;  %v458_v21 = vadd.f32 %v457_v11, %v456_v49  ;;  %v481_v0 = vrot.slane %v480_v6, 1  ;;  %v634_v29 = vrot.slane %v616_v8, 4 }
  0xba   : > { %v640_v30 = vrot.slane %v617_v10, 4  ;;  %v464_v31 = vadd.f32 %v463_v13, %v462_v52  ;;  %v487_v2 = vrot.slane %v486_v12, 1  ;;  %v646_v34 = vrot.slane %v618_v56, 4 }
  0xbb   : > { %v652_v35 = vrot.slane %v619_v58, 4  ;;  %v470_v36 = vadd.f32 %v469_v15, %v468_v57  ;;  %v493_v37 = vrot.slane %v492_v16, 1  ;;  %v623_v38 = vadd.f32 %v622_v14, %v614_v4 }
  0xbc   : > { %v629_v39 = vadd.f32 %v628_v17, %v615_v9  ;;  %v476_v40 = vadd.f32 %v475_v60, %v474_v3  ;;  %1085 = vlog2.f32 %v452_v18  ;;  %v658_v41 = vrot.slane %v620_v63, 4 }
  0xbd   : > { %v664_v7 = vrot.slane %v621_v20, 4  ;;  %v482_v42 = vadd.f32 %v481_v0, %v480_v6  ;;  %1087 = vlog2.f32 %v458_v21  ;;  %v635_v43 = vadd.f32 %v634_v29, %v616_v8 }
  0xbe   : > { %v641_v5 = vadd.f32 %v640_v30, %v617_v10  ;;  %v488_v44 = vadd.f32 %v487_v2, %v486_v12  ;;  %1089 = vlog2.f32 %v464_v31  ;;  %v647_v45 = vadd.f32 %v646_v34, %v618_v56 }
  0xbf   : > { %v494_v46 = vadd.f32 %v493_v37, %v492_v16  ;;  %1091 = vlog2.f32 %v470_v36  ;;  %v653_v49 = vadd.f32 %v652_v35, %v619_v58  ;;  %v624_v50 = vrot.slane %v623_v38, 2 }
  0xc0   : > { %1093 = vlog2.f32 %v476_v40  ;;  %v659_v52 = vadd.f32 %v658_v41, %v620_v63  ;;  %v665_v53 = vadd.f32 %v664_v7, %v621_v20  ;;  %v630_v57 = vrot.slane %v629_v39, 2 }
  0xc1   : > { %1095 = vlog2.f32 %v482_v42  ;;  %v636_v59 = vrot.slane %v635_v43, 2  ;;  %v642_v1 = vrot.slane %v641_v5, 2  ;;  %v648_v3 = vrot.slane %v647_v45, 2 }
  0xc2   : > { %1097 = vlog2.f32 %v488_v44  ;;  %v654_v4 = vrot.slane %v653_v49, 2  ;;  %v625_v9 = vadd.f32 %v624_v50, %v623_v38  ;;  %v660_v11 = vrot.slane %v659_v52, 2 }
  0xc3   : > { %1099 = vlog2.f32 %v494_v46  ;;  %v666_v6 = vrot.slane %v665_v53, 2  ;;  %v631_v8 = vadd.f32 %v630_v57, %v629_v39  ;;  %v637_v10 = vadd.f32 %v636_v59, %v635_v43 }
  0xc4   : > { %v643_v13 = vadd.f32 %v642_v1, %v641_v5  ;;  %v649_v56 = vadd.f32 %v648_v3, %v647_v45  ;;  %v655_v15 = vadd.f32 %v654_v4, %v653_v49  ;;  %v626_v14 = vrot.slane %v625_v9, 1 }
  0xc5   : > { %v661_v17 = vadd.f32 %v660_v11, %v659_v52  ;;  %v667_v18 = vadd.f32 %v666_v6, %v665_v53  ;;  %v632_v63 = vrot.slane %v631_v8, 1  ;;  %v638_v20 = vrot.slane %v637_v10, 1 }
  0xc6   : > { %v1086_v12 = vpop.eup %1085  ;;  %v644_v21 = vrot.slane %v643_v13, 1  ;;  %v650_v29 = vrot.slane %v649_v56, 1  ;;  %v1289_v30 = vmov 1966171168   ;;  %v656_v34 = vrot.slane %v655_v15, 1 }
  0xc7   : > { %v1088_v58 = vpop.eup %1087  ;;  %v708_v31 = vunpack.c.l.s4 %v1289_v30  ;;  %v1684_v36 = vadd.f32 %v626_v14, %v625_v9  ;;  %v662_v37 = vrot.slane %v661_v17, 1  ;;  %v668_v38 = vrot.slane %v667_v18, 1 }
  0xc8   : > { %v1090_v16 = vpop.eup %1089  ;;  %v1686_v40 = vmul.f32 0.6931472, %v1086_v12  ;;  %v1688_v41 = vadd.f32 %v632_v63, %v631_v8  ;;  %v1690_v7 = vadd.f32 %v638_v20, %v637_v10  ;;  %v1692_v42 = vadd.f32 %v644_v21, %v643_v13 }
  0xc9   : > { %v1092_v60 = vpop.eup %1091  ;;  %v1694_v43 = vmul.f32 0.6931472, %v1088_v58  ;;  %v1696_v5 = vmul.f32 0.6931472, %v1090_v16  ;;  %v1698_v44 = vadd.f32 %v650_v29, %v649_v56  ;;  %v709_v45 = vunpack.c.0.s8 %v708_v31 }
  0xca   : > { %v1094_v0 = vpop.eup %1093  ;;  %v1700_v46 = vmul.f32 0.6931472, %v1092_v60  ;;  %v1706_v52 = vadd.f32 %v656_v34, %v655_v15  ;;  %v1712_v59 = vadd.f32 %v662_v37, %v661_v17  ;;  %v1714_v1 = vadd.f32 %v668_v38, %v667_v18 }
  0xcb   : > { %v1096_v2 = vpop.eup %1095  ;;  %v1702_v49 = vmul.f32 0.6931472, %v1094_v0  ;;  %v670_v3 = vsub.f32 %v1686_v40, %v1684_v36  ;;  %v671_v4 = vsub.f32 %v1694_v43, %v1688_v41  ;;  %v672_v9 = vsub.f32 %v1696_v5, %v1690_v7 }
  0xcc   : > { %v1098_v35 = vpop.eup %1097  ;;  %v1704_v50 = vmul.f32 0.6931472, %v1096_v2  ;;  %v1725_v6 = vsub.s32 %v709_v45, %v1558_v19 }
  0xcd   : > { %v1100_v39 = vpop.eup %1099  ;;  %v1708_v53 = vmul.f32 0.6931472, %v1098_v35 }
  0xce   : > { %v1710_v57 = vmul.f32 0.6931472, %v1100_v39  ;;  %v1917_v36 = vsub.f32 %v1704_v50, %v1706_v52 }
  0xcf   : > { %v1918_v41 = vsub.f32 %v1708_v53, %v1712_v59 }
  0xd0   : > { %v1919_v7 = vsub.f32 %v1710_v57, %v1714_v1 }
 0x10a   : > { %v556_v8 = vpop.permute.xlu0 %555 }
 0x10b   : > { %v558_v58 = vsel %vm1621_vm8, %v556_v8, 0.0  ;;  %v559_v19 = vsel %vm1626_vm9, %v556_v8, 0.0  ;;  %v560_v15 = vsel %vm1631_vm10, %v556_v8, 0.0  ;;  %v561_v16 = vsel %vm1636_vm11, %v556_v8, 0.0 }
 0x10c   : > { %v562_v14 = vsel %vm1641_vm12, %v556_v8, 0.0  ;;  %v563_v17 = vsel %vm1646_vm13, %v556_v8, 0.0  ;;  %v564_v18 = vsel %vm1651_vm14, %v556_v8, 0.0  ;;  %v565_v47 = vsel %vm1656_vm15, %v556_v8, 0.0 }
 0x10d   : > { %v566_v48 = vrot.slane %v558_v58, 4  ;;  %v572_v60 = vrot.slane %v559_v19, 4  ;;  %v578_v63 = vrot.slane %v560_v15, 4  ;;  %v584_v51 = vrot.slane %v561_v16, 4 }
 0x10e   : > { %v590_v20 = vrot.slane %v562_v14, 4  ;;  %v596_v21 = vrot.slane %v563_v17, 4  ;;  %v602_v28 = vrot.slane %v564_v18, 4  ;;  %v608_v0 = vrot.slane %v565_v47, 4 }
 0x10f   : > { %v567_v29 = vadd.f32 %v566_v48, %v558_v58  ;;  %v573_v54 = vadd.f32 %v572_v60, %v559_v19  ;;  %v579_v30 = vadd.f32 %v578_v63, %v560_v15  ;;  %v585_v31 = vadd.f32 %v584_v51, %v561_v16 }
 0x110   : > { %v591_v55 = vadd.f32 %v590_v20, %v562_v14  ;;  %v597_v2 = vadd.f32 %v596_v21, %v563_v17  ;;  %v603_v34 = vadd.f32 %v602_v28, %v564_v18  ;;  %v609_v61 = vadd.f32 %v608_v0, %v565_v47 }
 0x111   : > { %v568_v35 = vrot.slane %v567_v29, 2  ;;  %v574_v37 = vrot.slane %v573_v54, 2  ;;  %v580_v62 = vrot.slane %v579_v30, 2  ;;  %v586_v38 = vrot.slane %v585_v31, 2 }
 0x112   : > { %v592_v39 = vrot.slane %v591_v55, 2  ;;  %v598_v45 = vrot.slane %v597_v2, 2  ;;  %v604_v8 = vrot.slane %v603_v34, 2  ;;  %v610_v56 = vrot.slane %v609_v61, 2 }
 0x113   : > { %v569_v12 = vadd.f32 %v568_v35, %v567_v29  ;;  %v575_v13 = vadd.f32 %v574_v37, %v573_v54  ;;  %v581_v10 = vadd.f32 %v580_v62, %v579_v30  ;;  %v587_v11 = vadd.f32 %v586_v38, %v585_v31 }
 0x114   : > { %v593_v58 = vadd.f32 %v592_v39, %v591_v55  ;;  %v599_v19 = vadd.f32 %v598_v45, %v597_v2  ;;  %v605_v15 = vadd.f32 %v604_v8, %v603_v34  ;;  %v611_v16 = vadd.f32 %v610_v56, %v609_v61 }
 0x115   : > { %v570_v14 = vrot.slane %v569_v12, 1  ;;  %v576_v17 = vrot.slane %v575_v13, 1  ;;  %v582_v18 = vrot.slane %v581_v10, 1  ;;  %v588_v47 = vrot.slane %v587_v11, 1 }
 0x116   : > { %v594_v48 = vrot.slane %v593_v58, 1  ;;  %v600_v60 = vrot.slane %v599_v19, 1  ;;  %v606_v63 = vrot.slane %v605_v15, 1  ;;  %v612_v51 = vrot.slane %v611_v16, 1 }
 0x117   : > { %v571_v20 = vadd.f32 %v570_v14, %v569_v12  ;;  %v577_v21 = vadd.f32 %v576_v17, %v575_v13  ;;  %v583_v28 = vadd.f32 %v582_v18, %v581_v10  ;;  %v589_v0 = vadd.f32 %v588_v47, %v587_v11  ;;  %v958_v14 = vld [vmem:[%s1516_s29 + $0x1] ss:$2 sm:$0xff] }
 0x118   : > { %v595_v29 = vadd.f32 %v594_v48, %v593_v58  ;;  %v601_v54 = vadd.f32 %v600_v60, %v599_v19  ;;  %v607_v30 = vadd.f32 %v606_v63, %v605_v15  ;;  %v613_v31 = vadd.f32 %v612_v51, %v611_v16  ;;  %v694_v58 = vld [vmem:[%s1516_s29] ss:$2 sm:$0xff] }
 0x119   : > { %v678_v56 = vmul.f32 %v670_v3, %v571_v20  ;;  %v679_v55 = vmul.f32 %v671_v4, %v577_v21  ;;  %v680_v2 = vmul.f32 %v672_v9, %v583_v28  ;;  %v1915_v10 = vsub.f32 %v1700_v46, %v1692_v42 }
 0x11a   : > { %v1916_v13 = vsub.f32 %v1702_v49, %v1698_v44  ;;  %v683_v40 = vmul.f32 %v1917_v36, %v601_v54  ;;  %v684_v43 = vmul.f32 %v1918_v41, %v607_v30  ;;  %v685_v5 = vmul.f32 %v1919_v7, %v613_v31 }
 0x11b   : > { %v681_v11 = vmul.f32 %v1915_v10, %v589_v0  ;;  %v686_v42 = vsel %vm327_vm0, %v678_v56, 0.0  ;;  %v687_v46 = vsel %vm328_vm1, %v679_v55, 0.0  ;;  %v688_v44 = vsel %vm329_vm2, %v680_v2, 0.0 }
 0x11c   : > { %v682_v12 = vmul.f32 %v1916_v13, %v595_v29  ;;  %v691_v52 = vsel %vm332_vm5, %v683_v40, 0.0  ;;  %v692_v53 = vsel %vm333_vm6, %v684_v43, 0.0  ;;  %v693_v22 = vsel %vm334_vm7, %v685_v5, 0.0 }
 0x11d   : > { %v689_v49 = vsel %vm330_vm3, %v681_v11, 0.0  ;;  %v703_v23 = vcombine.low %v686_v42, %v687_v46  ;;  %v706_v24 = vcombine.low %v692_v53, %v693_v22  ;;  %v765_v1 = vcombine.low %v571_v20, %v577_v21 }
 0x11e   : > { %v690_v50 = vsel %vm331_vm4, %v682_v12, 0.0  ;;  %v704_v57 = vcombine.low %v688_v44, %v689_v49  ;;  %v766_v3 = vcombine.low %v583_v28, %v589_v0  ;;  %v767_v25 = vcombine.low %v595_v29, %v601_v54 }
 0x11f   : > { %v705_v59 = vcombine.low %v690_v50, %v691_v52  ;;  %v768_v4 = vcombine.low %v607_v30, %v613_v31  ;;  %v713_v26 = vrot.slane %v703_v23, %v1725_v6  ;;  %v734_v32 = vrot.slane %v706_v24, %v1725_v6 }
 0x120   : > { %v720_v27 = vrot.slane %v704_v57, %v1725_v6  ;;  %v775_v33 = vrot.slane %v765_v1, %v1725_v6  ;;  %v782_v34 = vrot.slane %v766_v3, %v1725_v6  ;;  %v789_v61 = vrot.slane %v767_v25, %v1725_v6 }
 0x121   : > { %v727_v9 = vrot.slane %v705_v59, %v1725_v6  ;;  %v796_v35 = vrot.slane %v768_v4, %v1725_v6 }
 0x122   : > { %v735_v37 = vcombine.low %v713_v26, %v720_v27  ;;  %v797_v38 = vcombine.low %v775_v33, %v782_v34 }
 0x123   : > { %v736_v62 = vcombine.low %v727_v9, %v734_v32  ;;  %v798_v39 = vcombine.low %v789_v61, %v796_v35 }
 0x124   : > { %v743_v45 = vrot.slane %v735_v37, %v1725_v6  ;;  %v805_v19 = vrot.slane %v797_v38, %v1725_v6 }
 0x125   : > { %v750_v8 = vrot.slane %v736_v62, %v1725_v6  ;;  %v812_v15 = vrot.slane %v798_v39, %v1725_v6 }
 0x127   : > { %v751_v16 = vcombine.low %v743_v45, %v750_v8  ;;  %v813_v17 = vcombine.low %v805_v19, %v812_v15 }
 0x129   : > { %v753_v18 = vadd.f32 %v751_v16, %v694_v58  ;;  %v815_v47 = vadd.f32 %v958_v14, %v813_v17 }
 0x12b   : > { %754 = vst [vmem:[%s1516_s29] ss:$2 sm:$0xff] %v753_v18  ;;  %959 = vst [vmem:[%s1516_s29 + $0x1] ss:$2 sm:$0xff] %v815_v47 }
 0x12c   : > { %1170 = shalt.err (!%p1167_p13)
}
 0x12d   : > { %s1171_s23 = scalar_lea.hbm %s1810_s4, 256  ;;  %s1175_s29 = scalar_lea.hbm %s1879_s3, 512 }
 0x12e   : > { %p1172_p1 = scmp.ne.s32.totalorder %s1810_s4, %s1171_s23  ;;  %p1176_p2 = scmp.lt.u32.totalorder %s1810_s4, %s1879_s3 }
 0x12f   : > { %p1177_p4 = scmp.lt.u32.totalorder %s1175_s29, %s1171_s23  ;;  %p1179_p6 = scmp.lt.u32.totalorder %s1171_s23, %s1810_s4 }
 0x130   : > { %p1173_p7 = pnand %p1172_p1, %p1920_p9 }
 0x131   : > { %p1178_p5 = por %p1177_p4, %p1176_p2 }
 0x132   : > { %p1174_p12 = pneg %p1173_p7 }
 0x133   : > { %p1180_p10 = por %p1179_p6, %p1178_p5 }
 0x135   : > { %p1181_p0 = pnand %p1180_p10, %p1174_p12 }
 0x137   : > { %1184 = shalt.err (!%p1181_p0)
}
 0x138   : > { %970 = dma.vmem_to_hbm [thread:$0]  (%p1920_p9), %s1812_s24, 256, %s1810_s4, %s818_s26  }
 0x139 PF: > { %p976_p11 = scmp.ge.s32.totalorder %s1283_s22, 2  ;;  %s844_s8 = sand.u32 1, %s1243_s12  }
 0x13a   : > { %p1921_p3 = scmp.ne.s32.totalorder %s1896_s27, 0  ;;  %s845_s6 = scalar_lea.sflag [#allocation4], %s844_s8 }
 0x13c   : > { %p973_p8 = pnand %p976_p11, %p1921_p3 }
 0x13e   : > { %1238 = dma.done.wait (!%p973_p8), %s845_s6, 256  }
 0x13f   : > { %1240 = vsyncadd (!%p973_p8), %s845_s6, 4294967040  ;;  %s22_s22 = sadd.s32 1, %s1283_s22   ;;  %s1922_s11 = sld [smem:[#allocation15_spill]] }
 0x140   : > { %p19_p13 = scmp.ge.s32.totalorder %s22_s22, 8   ;;  %s1923_s28 = sld [smem:[#allocation16_spill]] }
 0x141   : > { %s1924_s18 = sld [smem:[#allocation11_spill]]  ;;  %s1925_s19 = sld [smem:[#allocation12_spill]] }
 0x142   : > { %s1926_s20 = sld [smem:[#allocation13_spill]]  ;;  %s1927_s21 = sld [smem:[#allocation14_spill]] }
 0x143   : > { %s1928_s12 = smov %s1247_s13  ;;  %s1929_s13 = smov %s1251_s14 }
 0x144   : > { %s1931_s15 = smov %s1259_s16  ;;  %s1932_s16 = smov %s1263_s17 }
 0x145   : > { %s1930_s14 = smov %s1922_s11  ;;  %21 = sbr.rel (!%p19_p13) target bundleno = 11 (0xb), region = 95 }
 0x146   : > { %s1933_s17 = smov %s1923_s28 }
 0x14c   :  { %850 = vsyncpa [#allocation3], 1 }
 0x14d   :  { %852 = vsyncpa [#allocation3 + $0x1], 1 }
 0x14e   :  { %853 = vsyncpa [#allocation6], 1 }
 0x14f   :  { %855 = vsyncpa [#allocation6 + $0x1], 1 }
 0x150   :  { %856 = vsyncpa [#allocation4], 1 }
 0x151   :  { %858 = vsyncpa [#allocation4 + $0x1], 1 }

</bundles_post_ra>
